<compile_context>
chip_gen: v6e
topology: v6e:2x2x1
jax: 0.10.0
libtpu: 0.0.40
codegen_flags: <defaults>
</compile_context>

<pallas_src>
import functools

import jax
import jax.numpy as jnp
from jax.experimental import pallas as pl
from jax.experimental.pallas import tpu as pltpu


# ----------------------------------------------------------------------------
# Pallas kernel: one grid step == one batch element, fully fused forward.
# ----------------------------------------------------------------------------
def _layer_atten_kernel(sf_ref, s1_ref, s2_ref, s3_ref, w_ref, b_ref,
                        noise_ref, o_ref):
    # Block shapes (per grid step):
    #   sf_ref    : (1, K, F)   F = 4*ngf*4*4   flattened (4ngf, 4, 4) features
    #   s{1,2,3}  : (1, K, C)   C = 4*ngf
    #   w_ref     : (3, F)      torch nn.Linear weight layout (lane-dense)
    #   b_ref     : (1, 3)
    #   noise_ref : (1, C, HW)  standard-normal noise, HW = 16*16 = 256 lanes
    #   o_ref     : (1, C, HW)

    # mean over the K reference styles of the flattened (4ngf,4,4) features
    mean_flat = jnp.mean(sf_ref[0], axis=0, keepdims=True)                # (1, F)

    # fc: logits = mean_flat @ W^T + b   (contract the 4096-lane feature dim)
    logits = jax.lax.dot_general(
        mean_flat, w_ref[...], (((1,), (1,)), ((), ())),
        preferred_element_type=jnp.float32) + b_ref[...]                  # (1, 3)

    # softmax over the 3 layer scores (stays in VMEM, never written to HBM)
    logits = logits - jnp.max(logits, axis=-1, keepdims=True)
    e = jnp.exp(logits)
    wts = e / jnp.sum(e, axis=-1, keepdims=True)                          # (1, 3)

    # per-layer pooled styles, averaged over K
    m1 = jnp.mean(s1_ref[0], axis=0, keepdims=True)                       # (1, C)
    m2 = jnp.mean(s2_ref[0], axis=0, keepdims=True)                       # (1, C)
    m3 = jnp.mean(s3_ref[0], axis=0, keepdims=True)                       # (1, C)

    # weighted mix (matches torch weight.narrow(1, i, 1) broadcasting)
    style = m1 * wts[:, 0:1] + m2 * wts[:, 1:2] + m3 * wts[:, 2:3]        # (1, C)

    # broadcast over the 256 spatial lanes and add the scaled gaussian noise
    o_ref[...] = style[:, :, None] + 0.02 * noise_ref[...]                # (1, C, HW)


# ----------------------------------------------------------------------------
# Wrapper: layout plumbing only (free reshapes), one pallas_call.
# ----------------------------------------------------------------------------
def ftgan_layer_atten(style_features, style_features_1, style_features_2,
                      style_features_3, B, K, fc_w, fc_b, noise, *, ngf=64):
    C = ngf * 4              # 4*ngf channels
    F = C * 4 * 4            # flattened (4ngf, 4, 4) = fc input size (4096 @ ngf=64)
    H = W_sp = 16
    HW = H * W_sp

    sf = style_features.reshape(B, K, F).astype(jnp.float32)
    s1 = style_features_1.reshape(B, K, C).astype(jnp.float32)
    s2 = style_features_2.reshape(B, K, C).astype(jnp.float32)
    s3 = style_features_3.reshape(B, K, C).astype(jnp.float32)
    w = fc_w.astype(jnp.float32)                        # (3, F) torch Linear layout
    b = fc_b.reshape(1, 3).astype(jnp.float32)
    nz = noise.reshape(B, C, HW).astype(jnp.float32)    # standard normal

    out = pl.pallas_call(
        _layer_atten_kernel,
        out_shape=jax.ShapeDtypeStruct((B, C, HW), jnp.float32),
        grid=(B,),
        in_specs=[
            pl.BlockSpec((1, K, F), lambda i: (i, 0, 0)),
            pl.BlockSpec((1, K, C), lambda i: (i, 0, 0)),
            pl.BlockSpec((1, K, C), lambda i: (i, 0, 0)),
            pl.BlockSpec((1, K, C), lambda i: (i, 0, 0)),
            pl.BlockSpec((3, F), lambda i: (0, 0)),
            pl.BlockSpec((1, 3), lambda i: (0, 0)),
            pl.BlockSpec((1, C, HW), lambda i: (i, 0, 0)),
        ],
        out_specs=pl.BlockSpec((1, C, HW), lambda i: (i, 0, 0)),
        compiler_params=pltpu.CompilerParams(
            dimension_semantics=("parallel",)),   # megacore shard over B on v7x
    )(sf, s1, s2, s3, w, b, nz)

    return out.reshape(B, C, H, W_sp)             # NCHW (B, 4*ngf, 16, 16)


# ----------------------------------------------------------------------------
# Pure-JAX reference (mirrors the PyTorch forward exactly) for a sanity check.
# ----------------------------------------------------------------------------
def _reference(style_features, s1, s2, s3, B, K, fc_w, fc_b, noise, ngf=64):
    C = ngf * 4
    sf = jnp.mean(style_features.reshape(B, K, C, 4, 4), axis=1).reshape(B, -1)
    wts = jax.nn.softmax(sf @ fc_w.T + fc_b, axis=1)
    m1 = jnp.mean(s1.reshape(B, K, C), axis=1)
    m2 = jnp.mean(s2.reshape(B, K, C), axis=1)
    m3 = jnp.mean(s3.reshape(B, K, C), axis=1)
    style = m1 * wts[:, 0:1] + m2 * wts[:, 1:2] + m3 * wts[:, 2:3]
    return style[:, :, None, None] + 0.02 * noise.reshape(B, C, 16, 16)


# ----------------------------------------------------------------------------
if __name__ == "__main__":
    ngf = 64                 # module default: fc = Linear(4*ngf*4*4 = 4096, 3)
    B, K = 2, 3
    C = ngf * 4

    key = jax.random.PRNGKey(0)
    k_sf, k_s1, k_s2, k_s3, k_w, k_b, k_noise = jax.random.split(key, 7)

    style_features   = jax.random.normal(k_sf, (B * K, C, 4, 4), jnp.float32)
    style_features_1 = jax.random.normal(k_s1, (B * K, C), jnp.float32)
    style_features_2 = jax.random.normal(k_s2, (B * K, C), jnp.float32)
    style_features_3 = jax.random.normal(k_s3, (B * K, C), jnp.float32)
    fc_w = 0.02 * jax.random.normal(k_w, (3, C * 16), jnp.float32)   # Linear(4096, 3).weight
    fc_b = 0.01 * jax.random.normal(k_b, (3,), jnp.float32)
    # deterministic stand-in for torch.randn([B, 4*ngf, 16, 16], device='cuda')
    noise = jax.random.normal(k_noise, (B, C, 16, 16), jnp.float32)

    fwd = jax.jit(lambda a, b1, b2, b3, w_, bi_, nz_:
                  ftgan_layer_atten(a, b1, b2, b3, B, K, w_, bi_, nz_, ngf=ngf))
    out = fwd(style_features, style_features_1, style_features_2,
              style_features_3, fc_w, fc_b, noise)
    out = jax.block_until_ready(out)

    assert out.shape == (B, C, 16, 16), out.shape
    assert bool(jnp.all(jnp.isfinite(out)))

    ref = _reference(style_features, style_features_1, style_features_2,
                     style_features_3, B, K, fc_w, fc_b, noise, ngf=ngf)
    assert bool(jnp.allclose(out, ref, atol=1e-3, rtol=1e-3)), \
        float(jnp.max(jnp.abs(out - ref)))

    print("KERNEL_OK")
</pallas_src>

<mosaic_0001>
module attributes {stable_mosaic.version = 11 : i64} {
  func.func @_layer_atten_kernel(%arg0: i32, %arg1: memref<1x3x4096xf32, #tpu.memory_space<vmem>>, %arg2: memref<1x3x256xf32, #tpu.memory_space<vmem>>, %arg3: memref<1x3x256xf32, #tpu.memory_space<vmem>>, %arg4: memref<1x3x256xf32, #tpu.memory_space<vmem>>, %arg5: memref<3x4096xf32, #tpu.memory_space<vmem>>, %arg6: memref<1x3xf32, #tpu.memory_space<vmem>>, %arg7: memref<1x256x256xf32, #tpu.memory_space<vmem>>, %arg8: memref<1x256x256xf32, #tpu.memory_space<vmem>>) attributes {dimension_semantics = [#tpu.dimension_semantics<parallel>], iteration_bounds = array<i64: 2>, scalar_prefetch = 0 : i64, scratch_operands = 0 : i64, tpu.core_type = #tpu.core_type<tc>, window_params = [{transform_indices = @transform_0, window_bounds = array<i64: 1, 3, 4096>}, {transform_indices = @transform_1, window_bounds = array<i64: 1, 3, 256>}, {transform_indices = @transform_2, window_bounds = array<i64: 1, 3, 256>}, {transform_indices = @transform_3, window_bounds = array<i64: 1, 3, 256>}, {pipeline_mode = #tpu.pipeline_mode<synchronous>, transform_indices = @transform_4, window_bounds = array<i64: 3, 4096>}, {pipeline_mode = #tpu.pipeline_mode<synchronous>, transform_indices = @transform_5, window_bounds = array<i64: 1, 3>}, {transform_indices = @transform_6, window_bounds = array<i64: 1, 256, 256>}, {transform_indices = @transform_7, window_bounds = array<i64: 1, 256, 256>}]} {
    %c0 = arith.constant 0 : index
    %c0_0 = arith.constant 0 : index
    %c0_1 = arith.constant 0 : index
    %0 = vector.load %arg1[%c0, %c0_0, %c0_1] : memref<1x3x4096xf32, #tpu.memory_space<vmem>>, vector<1x3x4096xf32>
    %1 = vector.shape_cast %0 : vector<1x3x4096xf32> to vector<3x4096xf32>
    %cst = arith.constant dense<0.000000e+00> : vector<4096xf32>
    %2 = vector.multi_reduction <add>, %1, %cst [0] : vector<3x4096xf32> to vector<4096xf32>
    %3 = vector.shape_cast %2 : vector<4096xf32> to vector<1x4096xf32>
    %cst_2 = arith.constant 3.000000e+00 : f32
    %4 = vector.broadcast %cst_2 : f32 to vector<1x4096xf32>
    %5 = arith.divf %3, %4 : vector<1x4096xf32>
    %c0_3 = arith.constant 0 : index
    %c0_4 = arith.constant 0 : index
    %6 = vector.load %arg5[%c0_3, %c0_4] : memref<3x4096xf32, #tpu.memory_space<vmem>>, vector<3x4096xf32>
    %cst_5 = arith.constant dense<0.000000e+00> : vector<1x3xf32>
    %7 = tpu.matmul %5, %6, %cst_5 {dimension_numbers = #tpu.dot_dimension_numbers<[1], [1], [0], [0], [0, 0, 1, 0], [], []>} : vector<1x4096xf32>, vector<3x4096xf32>, vector<1x3xf32> -> vector<1x3xf32>
    %c0_6 = arith.constant 0 : index
    %c0_7 = arith.constant 0 : index
    %8 = vector.load %arg6[%c0_6, %c0_7] : memref<1x3xf32, #tpu.memory_space<vmem>>, vector<1x3xf32>
    %9 = arith.addf %7, %8 : vector<1x3xf32>
    %cst_8 = arith.constant dense<0xFF800000> : vector<1xf32>
    %10 = vector.multi_reduction <maximumf>, %9, %cst_8 [1] : vector<1x3xf32> to vector<1xf32>
    %11 = vector.shape_cast %10 : vector<1xf32> to vector<1x1xf32>
    %12 = vector.broadcast %11 : vector<1x1xf32> to vector<1x3xf32>
    %13 = arith.subf %9, %12 : vector<1x3xf32>
    %14 = math.exp %13 : vector<1x3xf32>
    %cst_9 = arith.constant dense<0.000000e+00> : vector<1xf32>
    %15 = vector.multi_reduction <add>, %14, %cst_9 [1] : vector<1x3xf32> to vector<1xf32>
    %16 = vector.shape_cast %15 : vector<1xf32> to vector<1x1xf32>
    %17 = vector.broadcast %16 : vector<1x1xf32> to vector<1x3xf32>
    %18 = arith.divf %14, %17 : vector<1x3xf32>
    %c0_10 = arith.constant 0 : index
    %c0_11 = arith.constant 0 : index
    %c0_12 = arith.constant 0 : index
    %19 = vector.load %arg2[%c0_10, %c0_11, %c0_12] : memref<1x3x256xf32, #tpu.memory_space<vmem>>, vector<1x3x256xf32>
    %20 = vector.shape_cast %19 : vector<1x3x256xf32> to vector<3x256xf32>
    %cst_13 = arith.constant dense<0.000000e+00> : vector<256xf32>
    %21 = vector.multi_reduction <add>, %20, %cst_13 [0] : vector<3x256xf32> to vector<256xf32>
    %22 = vector.shape_cast %21 : vector<256xf32> to vector<1x256xf32>
    %cst_14 = arith.constant 3.000000e+00 : f32
    %23 = vector.broadcast %cst_14 : f32 to vector<1x256xf32>
    %24 = arith.divf %22, %23 : vector<1x256xf32>
    %c0_15 = arith.constant 0 : index
    %c0_16 = arith.constant 0 : index
    %c0_17 = arith.constant 0 : index
    %25 = vector.load %arg3[%c0_15, %c0_16, %c0_17] : memref<1x3x256xf32, #tpu.memory_space<vmem>>, vector<1x3x256xf32>
    %26 = vector.shape_cast %25 : vector<1x3x256xf32> to vector<3x256xf32>
    %cst_18 = arith.constant dense<0.000000e+00> : vector<256xf32>
    %27 = vector.multi_reduction <add>, %26, %cst_18 [0] : vector<3x256xf32> to vector<256xf32>
    %28 = vector.shape_cast %27 : vector<256xf32> to vector<1x256xf32>
    %cst_19 = arith.constant 3.000000e+00 : f32
    %29 = vector.broadcast %cst_19 : f32 to vector<1x256xf32>
    %30 = arith.divf %28, %29 : vector<1x256xf32>
    %c0_20 = arith.constant 0 : index
    %c0_21 = arith.constant 0 : index
    %c0_22 = arith.constant 0 : index
    %31 = vector.load %arg4[%c0_20, %c0_21, %c0_22] : memref<1x3x256xf32, #tpu.memory_space<vmem>>, vector<1x3x256xf32>
    %32 = vector.shape_cast %31 : vector<1x3x256xf32> to vector<3x256xf32>
    %cst_23 = arith.constant dense<0.000000e+00> : vector<256xf32>
    %33 = vector.multi_reduction <add>, %32, %cst_23 [0] : vector<3x256xf32> to vector<256xf32>
    %34 = vector.shape_cast %33 : vector<256xf32> to vector<1x256xf32>
    %cst_24 = arith.constant 3.000000e+00 : f32
    %35 = vector.broadcast %cst_24 : f32 to vector<1x256xf32>
    %36 = arith.divf %34, %35 : vector<1x256xf32>
    %37 = vector.extract_strided_slice %18 {offsets = [0, 0], sizes = [1, 1], strides = [1, 1]} : vector<1x3xf32> to vector<1x1xf32>
    %38 = vector.broadcast %37 : vector<1x1xf32> to vector<1x256xf32>
    %39 = arith.mulf %24, %38 : vector<1x256xf32>
    %40 = vector.extract_strided_slice %18 {offsets = [0, 1], sizes = [1, 1], strides = [1, 1]} : vector<1x3xf32> to vector<1x1xf32>
    %41 = vector.broadcast %40 : vector<1x1xf32> to vector<1x256xf32>
    %42 = arith.mulf %30, %41 : vector<1x256xf32>
    %43 = arith.addf %39, %42 : vector<1x256xf32>
    %44 = vector.extract_strided_slice %18 {offsets = [0, 2], sizes = [1, 1], strides = [1, 1]} : vector<1x3xf32> to vector<1x1xf32>
    %45 = vector.broadcast %44 : vector<1x1xf32> to vector<1x256xf32>
    %46 = arith.mulf %36, %45 : vector<1x256xf32>
    %47 = arith.addf %43, %46 : vector<1x256xf32>
    %48 = vector.shape_cast %47 : vector<1x256xf32> to vector<1x256x1xf32>
    %c0_25 = arith.constant 0 : index
    %c0_26 = arith.constant 0 : index
    %c0_27 = arith.constant 0 : index
    %49 = vector.load %arg7[%c0_25, %c0_26, %c0_27] : memref<1x256x256xf32, #tpu.memory_space<vmem>>, vector<1x256x256xf32>
    %cst_28 = arith.constant 2.000000e-02 : f32
    %50 = vector.broadcast %cst_28 : f32 to vector<1x256x256xf32>
    %51 = arith.mulf %50, %49 : vector<1x256x256xf32>
    %52 = vector.broadcast %48 : vector<1x256x1xf32> to vector<1x256x256xf32>
    %53 = arith.addf %52, %51 : vector<1x256x256xf32>
    %c0_29 = arith.constant 0 : index
    %c0_30 = arith.constant 0 : index
    %c0_31 = arith.constant 0 : index
    %54 = vector.load %arg8[%c0_29, %c0_30, %c0_31] : memref<1x256x256xf32, #tpu.memory_space<vmem>>, vector<1x256x256xf32>
    tpu.vector_store %arg8[%c0_29, %c0_30, %c0_31], %53 {strides = array<i32>} : memref<1x256x256xf32, #tpu.memory_space<vmem>>, vector<1x256x256xf32>,
    return
  }
  func.func @transform_0(%arg0: i32) -> (i32, i32, i32) {
    %c0_i32 = arith.constant 0 : i32
    %c0_i32_0 = arith.constant 0 : i32
    %c0_i32_1 = arith.constant 0 : i32
    return %arg0, %c0_i32, %c0_i32_0 : i32, i32, i32
  }
  func.func @transform_1(%arg0: i32) -> (i32, i32, i32) {
    %c0_i32 = arith.constant 0 : i32
    %c0_i32_0 = arith.constant 0 : i32
    %c0_i32_1 = arith.constant 0 : i32
    return %arg0, %c0_i32, %c0_i32_0 : i32, i32, i32
  }
  func.func @transform_2(%arg0: i32) -> (i32, i32, i32) {
    %c0_i32 = arith.constant 0 : i32
    %c0_i32_0 = arith.constant 0 : i32
    %c0_i32_1 = arith.constant 0 : i32
    return %arg0, %c0_i32, %c0_i32_0 : i32, i32, i32
  }
  func.func @transform_3(%arg0: i32) -> (i32, i32, i32) {
    %c0_i32 = arith.constant 0 : i32
    %c0_i32_0 = arith.constant 0 : i32
    %c0_i32_1 = arith.constant 0 : i32
    return %arg0, %c0_i32, %c0_i32_0 : i32, i32, i32
  }
  func.func @transform_4(%arg0: i32) -> (i32, i32) {
    %c0_i32 = arith.constant 0 : i32
    %c0_i32_0 = arith.constant 0 : i32
    %c0_i32_1 = arith.constant 0 : i32
    return %c0_i32, %c0_i32_0 : i32, i32
  }
  func.func @transform_5(%arg0: i32) -> (i32, i32) {
    %c0_i32 = arith.constant 0 : i32
    %c0_i32_0 = arith.constant 0 : i32
    %c0_i32_1 = arith.constant 0 : i32
    return %c0_i32, %c0_i32_0 : i32, i32
  }
  func.func @transform_6(%arg0: i32) -> (i32, i32, i32) {
    %c0_i32 = arith.constant 0 : i32
    %c0_i32_0 = arith.constant 0 : i32
    %c0_i32_1 = arith.constant 0 : i32
    return %arg0, %c0_i32, %c0_i32_0 : i32, i32, i32
  }
  func.func @transform_7(%arg0: i32) -> (i32, i32, i32) {
    %c0_i32 = arith.constant 0 : i32
    %c0_i32_0 = arith.constant 0 : i32
    %c0_i32_1 = arith.constant 0 : i32
    return %arg0, %c0_i32, %c0_i32_0 : i32, i32, i32
  }
}

</mosaic_0001>

<bundles_post_ra>
// kernel: _lambda_.1
= control target key start
LH: loop header
LB: loop body
LE: loop exit
PB: predicated region body
PF: predicated region fallthrough
CT: control target
= control target key end

     0   :  { %s2583_s24 = smov 0   ;;  %s2959_s0 = inlined_call_operand.vmem [shape: f32[2,3,4096], index: 0, kind: input, shape index: {}]   ;;  %s2960_s1 = inlined_call_operand.vmem [shape: f32[2,3,256], index: 1, kind: input, shape index: {}]   ;;  %s2961_s2 = inlined_call_operand.vmem [shape: f32[2,3,256], index: 2, kind: input, shape index: {}]   ;;  %s2962_s3 = inlined_call_operand.vmem [shape: f32[2,3,256], index: 3, kind: input, shape index: {}]   ;;  %s2963_s4 = inlined_call_operand.vmem [shape: f32[3,4096], index: 4, kind: input, shape index: {}]   ;;  %s2964_s5 = inlined_call_operand.vmem [shape: f32[1,3], index: 5, kind: input, shape index: {}]   ;;  %s2965_s6 = inlined_call_operand.vmem [shape: f32[2,256,256], index: 6, kind: input, shape index: {}]   ;;  %s2966_s7 = inlined_call_operand.vmem [shape: f32[2,256,256], index: 7, kind: output, shape index: {}]  }
   0x1 LB: > { %s2454_s25 = sadd.s32 4294967295, %s2538_s24   ;;  %p2458_p0 = scmp.ge.s32.totalorder %s2538_s24, 1  ;;  %s2538_s24 = sphi %s2583_s24, %s17_s24  }
   0x2   : > { %p277_p1 = scmp.lt.s32.totalorder %s2538_s24, 3 }
   0x4   : > { %p278_p2 = pnand %p2458_p0, %p277_p1 }
   0x5   : > { %p329_p3 = scmp.lt.s32.totalorder (!%p278_p2), %s2454_s25, 1 }
   0x6   : > { %281 = sbr.rel (%p278_p2) target bundleno = 933 (0x3a5), region = 48 }
   0xb   : > { %v681_v0 = vld [vmem:[%s2963_s4] sm:$0x77]  ;;  %v682_v1 = vld [vmem:[%s2963_s4 + $0x8] sm:$0x77]  ;;  %v2600_v4 = vld [vmem:[%s2963_s4 + $0x10] sm:$0x77] }
   0xc   : > { %v714_v2 = vcombine.high %v681_v0, %v681_v0  ;;  %v715_v3 = vcombine.high %v682_v1, %v682_v1  ;;  %v2605_v5 = vld [vmem:[%s2963_s4 + $0x18] sm:$0x77]  ;;  %v2610_v6 = vld [vmem:[%s2963_s4 + $0x20] sm:$0x77]  ;;  %s2968_s25 = smov (!%p329_p3, %s2454_s25), 1  ;;  %v716_v7 = vcombine.high %v2600_v4, %v2600_v4  ;;  %vm423_vm0 = vcmask 1042432  }
   0xd   : > { %v717_v8 = vcombine.high %v2605_v5, %v2605_v5  ;;  %v2621_v9 = vld [vmem:[%s2963_s4 + $0x28] sm:$0x77]  ;;  %v2626_v10 = vld [vmem:[%s2963_s4 + $0x30] sm:$0x77]  ;;  %v718_v11 = vcombine.high %v2610_v6, %v2610_v6  ;;  %v2633_v12 = vld [vmem:[%s2963_s4 + $0x38] sm:$0x77] }
   0xe   : > { %776 = vmatprep.subr.mxu0 %v714_v2  ;;  %846 = vmatprep.subr.mxu1 %v715_v3  ;;  %v2638_v13 = vld [vmem:[%s2963_s4 + $0x40] sm:$0x77]  ;;  %v2643_v14 = vld [vmem:[%s2963_s4 + $0x48] sm:$0x77]  ;;  %s2473_s23 = sshll.u32 %s2968_s25, 7  ;;  %v719_v15 = vcombine.high %v2621_v9, %v2621_v9  ;;  %v720_v16 = vcombine.high %v2626_v10, %v2626_v10  ;;  %v721_v17 = vcombine.high %v2633_v12, %v2633_v12  ;;  %vm1866_vm1 = vcmask 16384  }
   0xf   : > { %777 = vmatpush1.xpose.msra.mxu0 %v681_v0  ;;  %847 = vmatpush1.xpose.msra.mxu1 %v682_v1  ;;  %v2655_v18 = vld [vmem:[%s2963_s4 + $0x50] sm:$0x77]  ;;  %v2660_v19 = vld [vmem:[%s2963_s4 + $0x58] sm:$0x77]  ;;  %s2665_s9 = scalar_lea.vmem %s2959_s0, %s2473_s23  ;;  %v722_v20 = vcombine.high %v2638_v13, %v2638_v13  ;;  %v723_v21 = vcombine.high %v2643_v14, %v2643_v14  ;;  %v2676_v23 = vld [vmem:[%s2963_s4 + $0x60] sm:$0x77] }
  0x10   : > { %916 = vmatprep.subr.mxu0 %v716_v7  ;;  %986 = vmatprep.subr.mxu1 %v717_v8  ;;  %v724_v22 = vcombine.high %v2655_v18, %v2655_v18  ;;  %v2681_v24 = vld [vmem:[%s2963_s4 + $0x68] sm:$0x77]  ;;  %v2686_v25 = vld [vmem:[%s2963_s4 + $0x70] sm:$0x77]  ;;  %v359_v26 = vld [vmem:[%s2665_s9] sm:$0x77]  ;;  %v725_v29 = vcombine.high %v2660_v19, %v2660_v19  ;;  %v726_v30 = vcombine.high %v2676_v23, %v2676_v23 }
  0x11   : > { %v360_v27 = vld [vmem:[%s2665_s9 + $0x8] sm:$0x77]  ;;  %v361_v28 = vld [vmem:[%s2665_s9 + $0x10] sm:$0x77]  ;;  %v727_v31 = vcombine.high %v2681_v24, %v2681_v24  ;;  %v728_v32 = vcombine.high %v2686_v25, %v2686_v25  ;;  %v391_v33 = vcombine.high %v359_v26, %v359_v26  ;;  %v424_v35 = vsel %vm423_vm0, %v359_v26, 0.0  ;;  %s2474_s20 = sshll.u32 %s2968_s25, 3 }
  0x12   : > { %v392_v34 = vcombine.high %v360_v27, %v360_v27  ;;  %v438_v36 = vsel %vm423_vm0, %v360_v27, 0.0  ;;  %v362_v37 = vld [vmem:[%s2665_s9 + $0x18] sm:$0x77]  ;;  %v425_v38 = vrot.slane %v424_v35, 4  ;;  %v393_v40 = vcombine.high %v361_v28, %v361_v28  ;;  %s338_s23 = scalar_lea.vmem %s2960_s1, %s2474_s20  ;;  %s343_s28 = scalar_lea.vmem %s2961_s2, %s2474_s20 }
  0x13   : > { %v439_v39 = vrot.slane %v438_v36, 4  ;;  %v394_v41 = vcombine.high %v362_v37, %v362_v37  ;;  %v431_v42 = vsel %vm423_vm0, %v391_v33, 0.0  ;;  %v452_v44 = vsel %vm423_vm0, %v361_v28, 0.0  ;;  %s348_s8 = scalar_lea.vmem %s2962_s3, %s2474_s20 }
  0x14   : > { %v445_v43 = vsel %vm423_vm0, %v392_v34, 0.0  ;;  %v466_v45 = vsel %vm423_vm0, %v362_v37, 0.0  ;;  %v432_v46 = vrot.slane %v431_v42, 4  ;;  %v426_v48 = vadd.f32 %v425_v38, %v424_v35 }
  0x15   : > { %v446_v47 = vrot.slane %v445_v43, 4  ;;  %v440_v49 = vadd.f32 %v439_v39, %v438_v36  ;;  %v459_v50 = vsel %vm423_vm0, %v393_v40, 0.0  ;;  %v473_v51 = vsel %vm423_vm0, %v394_v41, 0.0 }
  0x16   : > { %v453_v52 = vrot.slane %v452_v44, 4  ;;  %v467_v53 = vrot.slane %v466_v45, 4  ;;  %v433_v54 = vadd.f32 %v432_v46, %v431_v42  ;;  %v427_v56 = vrot.slane %v426_v48, 2  ;;  %v363_v46 = vld [vmem:[%s2665_s9 + $0x20] sm:$0x77] }
  0x17   : > { %v447_v55 = vadd.f32 %v446_v47, %v445_v43  ;;  %v441_v57 = vrot.slane %v440_v49, 2  ;;  %v460_v58 = vrot.slane %v459_v50, 4  ;;  %v474_v59 = vrot.slane %v473_v51, 4  ;;  %v364_v47 = vld [vmem:[%s2665_s9 + $0x28] sm:$0x77] }
  0x18   : > { %v454_v60 = vadd.f32 %v453_v52, %v452_v44  ;;  %v468_v61 = vadd.f32 %v467_v53, %v466_v45  ;;  %v434_v62 = vrot.slane %v433_v54, 2  ;;  %v428_v0 = vadd.f32 %v427_v56, %v426_v48 }
  0x19   : > { %v448_v63 = vrot.slane %v447_v55, 2  ;;  %v442_v1 = vadd.f32 %v441_v57, %v440_v49  ;;  %v461_v2 = vadd.f32 %v460_v58, %v459_v50  ;;  %v475_v3 = vadd.f32 %v474_v59, %v473_v51 }
  0x1a   : > { %v455_v7 = vrot.slane %v454_v60, 2  ;;  %v469_v8 = vrot.slane %v468_v61, 2  ;;  %v435_v26 = vadd.f32 %v434_v62, %v433_v54  ;;  %v429_v28 = vrot.slane %v428_v0, 1 }
  0x1b   : > { %v449_v27 = vadd.f32 %v448_v63, %v447_v55  ;;  %v443_v33 = vrot.slane %v442_v1, 1  ;;  %v462_v34 = vrot.slane %v461_v2, 2  ;;  %v476_v35 = vrot.slane %v475_v3, 2 }
  0x1c   : > { %v456_v36 = vadd.f32 %v455_v7, %v454_v60  ;;  %v470_v37 = vadd.f32 %v469_v8, %v468_v61  ;;  %v436_v38 = vrot.slane %v435_v26, 1  ;;  %v430_v40 = vadd.f32 %v429_v28, %v428_v0  ;;  %v365_v60 = vld [vmem:[%s2665_s9 + $0x30] sm:$0x77] }
  0x1d   : > { %v450_v39 = vrot.slane %v449_v27, 1  ;;  %v444_v41 = vadd.f32 %v443_v33, %v442_v1  ;;  %v463_v42 = vadd.f32 %v462_v34, %v461_v2  ;;  %v477_v43 = vadd.f32 %v476_v35, %v475_v3  ;;  %v366_v1 = vld [vmem:[%s2665_s9 + $0x38] sm:$0x77] }
  0x1e   : > { %v457_v44 = vrot.slane %v456_v36, 1  ;;  %v471_v45 = vrot.slane %v470_v37, 1  ;;  %v437_v48 = vadd.f32 %v436_v38, %v435_v26  ;;  %v649_v50 = vmul.f32 0.33333334, %v430_v40 }
  0x1f   : > { %v451_v49 = vadd.f32 %v450_v39, %v449_v27  ;;  %v651_v51 = vmul.f32 0.33333334, %v444_v41  ;;  %v464_v52 = vrot.slane %v463_v42, 1  ;;  %v478_v53 = vrot.slane %v477_v43, 1 }
  0x20   : > { %v458_v54 = vadd.f32 %v457_v44, %v456_v36  ;;  %v472_v55 = vadd.f32 %v471_v45, %v470_v37  ;;  %v650_v56 = vmul.f32 0.33333334, %v437_v48  ;;  %v395_v58 = vcombine.high %v363_v46, %v363_v46 }
  0x21   : > { %v652_v57 = vmul.f32 0.33333334, %v451_v49  ;;  %v396_v59 = vcombine.high %v364_v47, %v364_v47  ;;  %v465_v61 = vadd.f32 %v464_v52, %v463_v42  ;;  %v479_v62 = vadd.f32 %v478_v53, %v477_v43 }
  0x22   : > { %v653_v63 = vmul.f32 0.33333334, %v458_v54  ;;  %v655_v0 = vmul.f32 0.33333334, %v472_v55  ;;  %810 = vmatprep.mubr.f32.mxu0 %v650_v56  ;;  %v487_v2 = vsel %vm423_vm0, %v395_v58, 0.0  ;;  %v480_v7 = vsel %vm423_vm0, %v363_v46, 0.0 }
  0x23   : > { %880 = vmatprep.mubr.f32.mxu1 %v652_v57  ;;  %v501_v3 = vsel %vm423_vm0, %v396_v59, 0.0  ;;  %v494_v8 = vsel %vm423_vm0, %v364_v47, 0.0  ;;  %811 = vmatmul.mubr.f32.vlgmr.msra.gmra.mxu0 %v649_v50  ;;  %v654_v26 = vmul.f32 0.33333334, %v465_v61  ;;  %v656_v27 = vmul.f32 0.33333334, %v479_v62 }
  0x24   : > { %881 = vmatmul.mubr.f32.vlgmr.msra.gmra.mxu1 %v651_v51  ;;  %v488_v28 = vrot.slane %v487_v2, 4  ;;  %v502_v33 = vrot.slane %v501_v3, 4  ;;  %917 = vmatpush1.xpose.msra.mxu0 %v2600_v4  ;;  %v481_v34 = vrot.slane %v480_v7, 4  ;;  %v495_v35 = vrot.slane %v494_v8, 4  ;;  %v367_v50 = vld [vmem:[%s2665_s9 + $0x40] sm:$0x77] }
  0x25   : > { %987 = vmatpush1.xpose.msra.mxu1 %v2605_v5  ;;  %v397_v36 = vcombine.high %v365_v60, %v365_v60  ;;  %v398_v37 = vcombine.high %v366_v1, %v366_v1  ;;  %950 = vmatprep.mubr.f32.mxu0 %v654_v26  ;;  %v508_v40 = vsel %vm423_vm0, %v365_v60, 0.0  ;;  %v522_v41 = vsel %vm423_vm0, %v366_v1, 0.0 }
  0x26   : > { %1020 = vmatprep.mubr.f32.mxu1 %v656_v27  ;;  %v489_v38 = vadd.f32 %v488_v28, %v487_v2  ;;  %v503_v39 = vadd.f32 %v502_v33, %v501_v3  ;;  %1056 = vmatprep.subr.mxu0 %v718_v11  ;;  %v482_v4 = vadd.f32 %v481_v34, %v480_v7  ;;  %v523_v49 = vrot.slane %v522_v41, 4  ;;  %v368_v27 = vld [vmem:[%s2665_s9 + $0x48] sm:$0x77] }
  0x27   : > { %1126 = vmatprep.subr.mxu1 %v719_v15  ;;  %v496_v5 = vadd.f32 %v495_v35, %v494_v8  ;;  %v515_v42 = vsel %vm423_vm0, %v397_v36, 0.0  ;;  %v529_v43 = vsel %vm423_vm0, %v398_v37, 0.0  ;;  %951 = vmatmul.mubr.f32.vlgmr.msra.gmra.mxu0 %v653_v63  ;;  %v509_v15 = vrot.slane %v508_v40, 4 }
  0x28   : > { %1021 = vmatmul.mubr.f32.vlgmr.msra.gmra.mxu1 %v655_v0  ;;  %v490_v44 = vrot.slane %v489_v38, 2  ;;  %v504_v45 = vrot.slane %v503_v39, 2  ;;  %v516_v46 = vrot.slane %v515_v42, 4  ;;  %v530_v47 = vrot.slane %v529_v43, 4  ;;  %1057 = vmatpush1.xpose.msra.mxu0 %v2610_v6 }
  0x29   : > { %1127 = vmatpush1.xpose.msra.mxu1 %v2621_v9  ;;  %v483_v11 = vrot.slane %v482_v4, 2  ;;  %v497_v48 = vrot.slane %v496_v5, 2  ;;  %1196 = vmatprep.subr.mxu0 %v720_v16  ;;  %v536_v6 = vsel %vm423_vm0, %v367_v50, 0.0  ;;  %v510_v56 = vadd.f32 %v509_v15, %v508_v40 }
  0x2a   : > { %v491_v51 = vadd.f32 %v490_v44, %v489_v38  ;;  %v505_v52 = vadd.f32 %v504_v45, %v503_v39  ;;  %1266 = vmatprep.subr.mxu1 %v721_v17  ;;  %v517_v53 = vadd.f32 %v516_v46, %v515_v42  ;;  %v531_v55 = vadd.f32 %v530_v47, %v529_v43  ;;  %v369_v46 = vld [vmem:[%s2665_s9 + $0x50] sm:$0x77] }
  0x2b   : > { %v484_v54 = vadd.f32 %v483_v11, %v482_v4  ;;  %v498_v9 = vadd.f32 %v497_v48, %v496_v5  ;;  %v524_v60 = vadd.f32 %v523_v49, %v522_v41  ;;  %v511_v16 = vrot.slane %v510_v56, 2  ;;  %v370_v49 = vld [vmem:[%s2665_s9 + $0x58] sm:$0x77] }
  0x2c   : > { %v492_v57 = vrot.slane %v491_v51, 1  ;;  %v506_v58 = vrot.slane %v505_v52, 1  ;;  %v518_v59 = vrot.slane %v517_v53, 2  ;;  %v532_v63 = vrot.slane %v531_v55, 2 }
  0x2d   : > { %v485_v61 = vrot.slane %v484_v54, 1  ;;  %v499_v62 = vrot.slane %v498_v9, 1  ;;  %v525_v17 = vrot.slane %v524_v60, 2  ;;  %v512_v26 = vadd.f32 %v511_v16, %v510_v56 }
  0x2e   : > { %v493_v0 = vadd.f32 %v492_v57, %v491_v51  ;;  %v507_v1 = vadd.f32 %v506_v58, %v505_v52  ;;  %v519_v2 = vadd.f32 %v518_v59, %v517_v53  ;;  %v533_v8 = vadd.f32 %v532_v63, %v531_v55 }
  0x2f   : > { %v486_v3 = vadd.f32 %v485_v61, %v484_v54  ;;  %v500_v7 = vadd.f32 %v499_v62, %v498_v9  ;;  %v526_v35 = vadd.f32 %v525_v17, %v524_v60  ;;  %v513_v39 = vrot.slane %v512_v26, 1 }
  0x30   : > { %v658_v28 = vmul.f32 0.33333334, %v493_v0  ;;  %v660_v33 = vmul.f32 0.33333334, %v507_v1  ;;  %v520_v34 = vrot.slane %v519_v2, 1  ;;  %v534_v38 = vrot.slane %v533_v8, 1 }
  0x31   : > { %v657_v36 = vmul.f32 0.33333334, %v486_v3  ;;  %v659_v37 = vmul.f32 0.33333334, %v500_v7  ;;  %v527_v41 = vrot.slane %v526_v35, 1  ;;  %v399_v4 = vcombine.high %v367_v50, %v367_v50 }
  0x32   : > { %1090 = vmatprep.mubr.f32.mxu0 %v658_v28  ;;  %1160 = vmatprep.mubr.f32.mxu1 %v660_v33  ;;  %v521_v40 = vadd.f32 %v520_v34, %v519_v2  ;;  %v400_v5 = vcombine.high %v368_v27, %v368_v27  ;;  %v535_v42 = vadd.f32 %v534_v38, %v533_v8  ;;  %v537_v44 = vrot.slane %v536_v6, 4 }
  0x33   : > { %1091 = vmatmul.mubr.f32.vlgmr.msra.gmra.mxu0 %v657_v36  ;;  %1161 = vmatmul.mubr.f32.vlgmr.msra.gmra.mxu1 %v659_v37  ;;  %v514_v43 = vadd.f32 %v513_v39, %v512_v26  ;;  %v550_v45 = vsel %vm423_vm0, %v368_v27, 0.0  ;;  %v528_v11 = vadd.f32 %v527_v41, %v526_v35  ;;  %v543_v48 = vsel %vm423_vm0, %v399_v4, 0.0  ;;  %v371_v4 = vld [vmem:[%s2665_s9 + $0x60] sm:$0x77] }
  0x34   : > { %1197 = vmatpush1.xpose.msra.mxu0 %v2626_v10  ;;  %1267 = vmatpush1.xpose.msra.mxu1 %v2633_v12  ;;  %v662_v47 = vmul.f32 0.33333334, %v521_v40  ;;  %v557_v15 = vsel %vm423_vm0, %v400_v5, 0.0  ;;  %v664_v50 = vmul.f32 0.33333334, %v535_v42  ;;  %v544_v10 = vrot.slane %v543_v48, 4 }
  0x35   : > { %1336 = vmatprep.subr.mxu0 %v722_v20  ;;  %v661_v51 = vmul.f32 0.33333334, %v514_v43  ;;  %1406 = vmatprep.subr.mxu1 %v723_v21  ;;  %v558_v52 = vrot.slane %v557_v15, 4  ;;  %v663_v12 = vmul.f32 0.33333334, %v528_v11  ;;  %v538_v53 = vadd.f32 %v537_v44, %v536_v6 }
  0x36   : > { %1230 = vmatprep.mubr.f32.mxu0 %v662_v47  ;;  %v551_v54 = vrot.slane %v550_v45, 4  ;;  %v401_v9 = vcombine.high %v369_v46, %v369_v46  ;;  %1300 = vmatprep.mubr.f32.mxu1 %v664_v50  ;;  %v545_v55 = vadd.f32 %v544_v10, %v543_v48  ;;  %v402_v57 = vcombine.high %v370_v49, %v370_v49 }
  0x37   : > { %1231 = vmatmul.mubr.f32.vlgmr.msra.gmra.mxu0 %v661_v51  ;;  %v559_v56 = vadd.f32 %v558_v52, %v557_v15  ;;  %v564_v58 = vsel %vm423_vm0, %v369_v46, 0.0  ;;  %1301 = vmatmul.mubr.f32.vlgmr.msra.gmra.mxu1 %v663_v12  ;;  %v539_v20 = vrot.slane %v538_v53, 2  ;;  %v578_v3 = vsel %vm423_vm0, %v370_v49, 0.0 }
  0x38   : > { %1337 = vmatpush1.xpose.msra.mxu0 %v2638_v13  ;;  %v552_v59 = vadd.f32 %v551_v54, %v550_v45  ;;  %v571_v21 = vsel %vm423_vm0, %v401_v9, 0.0  ;;  %v565_v60 = vrot.slane %v564_v58, 4  ;;  %1407 = vmatpush1.xpose.msra.mxu1 %v2643_v14  ;;  %v546_v6 = vrot.slane %v545_v55, 2  ;;  %v372_v45 = vld [vmem:[%s2665_s9 + $0x68] sm:$0x77] }
  0x39   : > { %v560_v61 = vrot.slane %v559_v56, 2  ;;  %1476 = vmatprep.subr.mxu0 %v724_v22  ;;  %v572_v62 = vrot.slane %v571_v21, 4  ;;  %v585_v63 = vsel %vm423_vm0, %v402_v57, 0.0  ;;  %v540_v16 = vadd.f32 %v539_v20, %v538_v53  ;;  %1546 = vmatprep.subr.mxu1 %v725_v29  ;;  %v2770_v54 = vld [vmem:[%s2963_s4 + $0x78] sm:$0x77] }
  0x3a   : > { %v553_v0 = vrot.slane %v552_v59, 2  ;;  %v586_v13 = vrot.slane %v585_v63, 4  ;;  %v566_v1 = vadd.f32 %v565_v60, %v564_v58  ;;  %v547_v2 = vadd.f32 %v546_v6, %v545_v55  ;;  %v373_v9 = vld [vmem:[%s2665_s9 + $0x70] sm:$0x77]  ;;  %v374_v20 = vld [vmem:[%s2665_s9 + $0x78] sm:$0x77] }
  0x3b   : > { %v561_v17 = vadd.f32 %v560_v61, %v559_v56  ;;  %v573_v14 = vadd.f32 %v572_v62, %v571_v21  ;;  %v541_v7 = vrot.slane %v540_v16, 1  ;;  %v579_v34 = vrot.slane %v578_v3, 4  ;;  %s2477_s9 = sshll.u32 %s2968_s25, 9 }
  0x3c   : > { %v554_v8 = vadd.f32 %v553_v0, %v552_v59  ;;  %v587_v22 = vadd.f32 %v586_v13, %v585_v63  ;;  %v567_v26 = vrot.slane %v566_v1, 2  ;;  %v548_v27 = vrot.slane %v547_v2, 1  ;;  %s2821_s12 = scalar_lea.vmem %s2965_s6, %s2477_s9  ;;  %s2834_s14 = scalar_lea.vmem %s2966_s7, %s2477_s9 }
  0x3d   : > { %v562_v28 = vrot.slane %v561_v17, 1  ;;  %v574_v33 = vrot.slane %v573_v14, 2  ;;  %v542_v35 = vadd.f32 %v541_v7, %v540_v16  ;;  %v580_v41 = vadd.f32 %v579_v34, %v578_v3 }
  0x3e   : > { %v555_v36 = vrot.slane %v554_v8, 1  ;;  %v588_v29 = vrot.slane %v587_v22, 2  ;;  %v568_v37 = vadd.f32 %v567_v26, %v566_v1  ;;  %v549_v38 = vadd.f32 %v548_v27, %v547_v2 }
  0x3f   : > { %v563_v39 = vadd.f32 %v562_v28, %v561_v17  ;;  %v575_v40 = vadd.f32 %v574_v33, %v573_v14  ;;  %v665_v5 = vmul.f32 0.33333334, %v542_v35  ;;  %v581_v48 = vrot.slane %v580_v41, 2 }
  0x40   : > { %v556_v42 = vadd.f32 %v555_v36, %v554_v8  ;;  %v589_v43 = vadd.f32 %v588_v29, %v587_v22  ;;  %v569_v44 = vrot.slane %v568_v37, 1  ;;  %v666_v46 = vmul.f32 0.33333334, %v549_v38 }
  0x41   : > { %v668_v47 = vmul.f32 0.33333334, %v563_v39  ;;  %v576_v11 = vrot.slane %v575_v40, 1  ;;  %v403_v51 = vcombine.high %v371_v4, %v371_v4  ;;  %v582_v52 = vadd.f32 %v581_v48, %v580_v41 }
  0x42   : > { %v667_v15 = vmul.f32 0.33333334, %v556_v42  ;;  %v590_v49 = vrot.slane %v589_v43, 1  ;;  %v570_v50 = vadd.f32 %v569_v44, %v568_v37  ;;  %1370 = vmatprep.mubr.f32.mxu0 %v666_v46  ;;  %v404_v12 = vcombine.high %v372_v45, %v372_v45 }
  0x43   : > { %1440 = vmatprep.mubr.f32.mxu1 %v668_v47  ;;  %v577_v10 = vadd.f32 %v576_v11, %v575_v40  ;;  %v592_v53 = vsel %vm423_vm0, %v371_v4, 0.0  ;;  %1371 = vmatmul.mubr.f32.vlgmr.msra.gmra.mxu0 %v665_v5  ;;  %v599_v57 = vsel %vm423_vm0, %v403_v51, 0.0  ;;  %v583_v21 = vrot.slane %v582_v52, 1 }
  0x44   : > { %1441 = vmatmul.mubr.f32.vlgmr.msra.gmra.mxu1 %v667_v15  ;;  %v591_v55 = vadd.f32 %v590_v49, %v589_v43  ;;  %v669_v56 = vmul.f32 0.33333334, %v570_v50  ;;  %v593_v58 = vrot.slane %v592_v53, 4  ;;  %1477 = vmatpush1.xpose.msra.mxu0 %v2655_v18  ;;  %v600_v60 = vrot.slane %v599_v57, 4 }
  0x45   : > { %1547 = vmatpush1.xpose.msra.mxu1 %v2660_v19  ;;  %v670_v59 = vmul.f32 0.33333334, %v577_v10  ;;  %v613_v6 = vsel %vm423_vm0, %v404_v12, 0.0  ;;  %1616 = vmatprep.subr.mxu0 %v726_v30  ;;  %v606_v18 = vsel %vm423_vm0, %v372_v45, 0.0  ;;  %v584_v19 = vadd.f32 %v583_v21, %v582_v52 }
  0x46   : > { %v672_v61 = vmul.f32 0.33333334, %v591_v55  ;;  %1686 = vmatprep.subr.mxu1 %v727_v31  ;;  %v614_v62 = vrot.slane %v613_v6, 4  ;;  %v594_v63 = vadd.f32 %v593_v58, %v592_v53  ;;  %v601_v16 = vadd.f32 %v600_v60, %v599_v57 }
  0x47   : > { %1510 = vmatprep.mubr.f32.mxu0 %v670_v59  ;;  %v607_v0 = vrot.slane %v606_v18, 4  ;;  %v729_v13 = vcombine.high %v2770_v54, %v2770_v54  ;;  %v405_v30 = vcombine.high %v373_v9, %v373_v9  ;;  %v406_v17 = vcombine.high %v374_v20, %v374_v20 }
  0x48   : > { %1580 = vmatprep.mubr.f32.mxu1 %v672_v61  ;;  %1511 = vmatmul.mubr.f32.vlgmr.msra.gmra.mxu0 %v669_v56  ;;  %v615_v1 = vadd.f32 %v614_v62, %v613_v6  ;;  %v595_v2 = vrot.slane %v594_v63, 2  ;;  %v671_v14 = vmul.f32 0.33333334, %v584_v19  ;;  %v602_v31 = vrot.slane %v601_v16, 2 }
  0x49   : > { %1617 = vmatpush1.xpose.msra.mxu0 %v2676_v23  ;;  %v608_v3 = vadd.f32 %v607_v0, %v606_v18  ;;  %v620_v7 = vsel %vm423_vm0, %v373_v9, 0.0  ;;  %v627_v26 = vsel %vm423_vm0, %v405_v30, 0.0  ;;  %v641_v27 = vsel %vm423_vm0, %v406_v17, 0.0  ;;  %v697_v18 = vld [vmem:[%s2964_s5] sm:$0x1] }
  0x4a   : > { %v616_v8 = vrot.slane %v615_v1, 2  ;;  %1756 = vmatprep.subr.mxu0 %v728_v32  ;;  %v596_v22 = vadd.f32 %v595_v2, %v594_v63  ;;  %1581 = vmatmul.mubr.f32.vlgmr.msra.gmra.mxu1 %v671_v14  ;;  %v603_v28 = vadd.f32 %v602_v31, %v601_v16  ;;  %v628_v34 = vrot.slane %v627_v26, 4 }
  0x4b   : > { %v609_v33 = vrot.slane %v608_v3, 2  ;;  %v642_v35 = vrot.slane %v641_v27, 4  ;;  %1687 = vmatpush1.xpose.msra.mxu1 %v2681_v24  ;;  %v621_v29 = vrot.slane %v620_v7, 4  ;;  %v634_v37 = vsel %vm423_vm0, %v374_v20, 0.0 }
  0x4c   : > { %v617_v23 = vadd.f32 %v616_v8, %v615_v1  ;;  %v597_v36 = vrot.slane %v596_v22, 1  ;;  %v604_v38 = vrot.slane %v603_v28, 1  ;;  %1826 = vmatprep.subr.mxu1 %v729_v13  ;;  %v629_v32 = vadd.f32 %v628_v34, %v627_v26 }
  0x4d   : > { %v610_v39 = vadd.f32 %v609_v33, %v608_v3  ;;  %v643_v40 = vadd.f32 %v642_v35, %v641_v27  ;;  %v622_v5 = vadd.f32 %v621_v29, %v620_v7  ;;  %v635_v42 = vrot.slane %v634_v37, 4 }
  0x4e   : > { %v618_v41 = vrot.slane %v617_v23, 1  ;;  %v598_v4 = vadd.f32 %v597_v36, %v596_v22  ;;  %v605_v43 = vadd.f32 %v604_v38, %v603_v28  ;;  %v630_v45 = vrot.slane %v629_v32, 2 }
  0x4f   : > { %v611_v44 = vrot.slane %v610_v39, 1  ;;  %v644_v46 = vrot.slane %v643_v40, 2  ;;  %v623_v11 = vrot.slane %v622_v5, 2  ;;  %v636_v48 = vadd.f32 %v635_v42, %v634_v37 }
  0x50   : > { %v619_v47 = vadd.f32 %v618_v41, %v617_v23  ;;  %v673_v24 = vmul.f32 0.33333334, %v598_v4  ;;  %v674_v15 = vmul.f32 0.33333334, %v605_v43  ;;  %v631_v50 = vadd.f32 %v630_v45, %v629_v32 }
  0x51   : > { %v612_v49 = vadd.f32 %v611_v44, %v610_v39  ;;  %v645_v51 = vadd.f32 %v644_v46, %v643_v40  ;;  %v624_v52 = vadd.f32 %v623_v11, %v622_v5  ;;  %v637_v12 = vrot.slane %v636_v48, 2 }
  0x52   : > { %v676_v10 = vmul.f32 0.33333334, %v619_v47  ;;  %1650 = vmatprep.mubr.f32.mxu0 %v674_v15  ;;  %v632_v9 = vrot.slane %v631_v50, 1 }
  0x53   : > { %v675_v53 = vmul.f32 0.33333334, %v612_v49  ;;  %v646_v55 = vrot.slane %v645_v51, 1  ;;  %1651 = vmatmul.mubr.f32.vlgmr.msra.gmra.mxu0 %v673_v24  ;;  %v625_v56 = vrot.slane %v624_v52, 1  ;;  %v638_v57 = vadd.f32 %v637_v12, %v636_v48 }
  0x54   : > { %1720 = vmatprep.mubr.f32.mxu1 %v676_v10  ;;  %1757 = vmatpush1.xpose.msra.mxu0 %v2686_v25  ;;  %v633_v58 = vadd.f32 %v632_v9, %v631_v50 }
  0x55   : > { %1721 = vmatmul.mubr.f32.vlgmr.msra.gmra.mxu1 %v675_v53  ;;  %v647_v20 = vadd.f32 %v646_v55, %v645_v51  ;;  %v626_v59 = vadd.f32 %v625_v56, %v624_v52  ;;  %v639_v21 = vrot.slane %v638_v57, 1 }
  0x56   : > { %1827 = vmatpush1.xpose.msra.mxu1 %v2770_v54  ;;  %v678_v60 = vmul.f32 0.33333334, %v633_v58  ;;  %v2540_v58 = vmov 2  }
  0x57   : > { %v680_v6 = vmul.f32 0.33333334, %v647_v20  ;;  %v677_v61 = vmul.f32 0.33333334, %v626_v59  ;;  %v640_v62 = vadd.f32 %v639_v21, %v638_v57  ;;  %2492 = vset.pattern.permute.xlu0 %v2540_v58  ;;  %v2541_v20 = vmov 0  }
  0x58   : > { %1790 = vmatprep.mubr.f32.mxu0 %v678_v60  ;;  %2490 = vset.pattern.permute.xlu1 %v2541_v20 }
  0x59   : > { %1860 = vmatprep.mubr.f32.mxu1 %v680_v6  ;;  %1791 = vmatmul.mubr.f32.vlgmr.msra.gmra.mxu0 %v677_v61  ;;  %v679_v63 = vmul.f32 0.33333334, %v640_v62  ;;  %v2542_v6 = vmov 1   ;;  %v1878_v61 = vld [vmem:[%s338_s23] sm:$0x77] }
  0x5a   : > { %v1898_v62 = vld [vmem:[%s343_s28] sm:$0x77] }
  0x5b   : > { %1861 = vmatmul.mubr.f32.vlgmr.msra.gmra.mxu1 %v679_v63  ;;  %v1882_v63 = vsel %vm423_vm0, %v1878_v61, 0.0 }
  0xe3   : > { %v812_v25 = vpop.f32.mrf.mxu0 }
  0xe4   : > { %v882_v19 = vpop.f32.mrf.mxu1  ;;  %v813_v16 = vadd.f32 %v812_v25, %v697_v18  ;;  %v1902_v18 = vsel %vm423_vm0, %v1898_v62, 0.0  ;;  %v1918_v25 = vld [vmem:[%s348_s8] sm:$0x77] }
  0xe5   : > { %v814_v0 = vpop.f32.mrf.mxu0 }
  0xe6   : > { %v884_v54 = vpop.f32.mrf.mxu1  ;;  %v883_v2 = vadd.f32 %v882_v19, %v813_v16  ;;  %v1922_v19 = vsel %vm423_vm0, %v1918_v25, 0.0  ;;  %v1900_v16 = vcombine.high %v1898_v62, %v1898_v62  ;;  %v1883_v0 = vrot.slane %v1882_v63, 4 }
  0xe7   : > { %v952_v13 = vpop.f32.mrf.mxu0  ;;  %v1903_v54 = vrot.slane %v1902_v18, 4 }
  0xe8   : > { %v1022_v1 = vpop.f32.mrf.mxu1  ;;  %v953_v14 = vadd.f32 %v952_v13, %v883_v2  ;;  %v1880_v13 = vcombine.high %v1878_v61, %v1878_v61  ;;  %v1909_v2 = vsel %vm423_vm0, %v1900_v16, 0.0 }
  0xe9   : > { %v954_v30 = vpop.f32.mrf.mxu0 }
  0xea   : > { %v1024_v17 = vpop.f32.mrf.mxu1  ;;  %v1023_v31 = vadd.f32 %v1022_v1, %v953_v14  ;;  %v1923_v1 = vrot.slane %v1922_v19, 4  ;;  %v1884_v30 = vadd.f32 %v1883_v0, %v1882_v63  ;;  %v1920_v14 = vcombine.high %v1918_v25, %v1918_v25 }
  0xeb   : > { %v1904_v17 = vadd.f32 %v1903_v54, %v1902_v18  ;;  %v2117_v54 = vld [vmem:[%s2821_s12 + $0xb0] sm:$0xff] }
  0xf3   : > { %v1092_v3 = vpop.f32.mrf.mxu0  ;;  %v1162_v7 = vpop.f32.mrf.mxu1 }
  0xf4   : > { %v1093_v8 = vadd.f32 %v1092_v3, %v1023_v31  ;;  %v1889_v31 = vsel %vm423_vm0, %v1880_v13, 0.0  ;;  %v1924_v3 = vadd.f32 %v1923_v1, %v1922_v19  ;;  %v2118_v13 = vld [vmem:[%s2821_s12 + $0xb8] sm:$0xff]  ;;  %v2095_v1 = vld [vmem:[%s2821_s12] sm:$0xff] }
  0xf5   : > { %v1094_v22 = vpop.f32.mrf.mxu0  ;;  %v1164_v26 = vpop.f32.mrf.mxu1 }
  0xf6   : > { %v1163_v33 = vadd.f32 %v1162_v7, %v1093_v8  ;;  %v1910_v7 = vrot.slane %v1909_v2, 4  ;;  %v1885_v8 = vrot.slane %v1884_v30, 2  ;;  %v1890_v22 = vrot.slane %v1889_v31, 4 }
  0xf7   : > { %v1232_v27 = vpop.f32.mrf.mxu0  ;;  %v1302_v28 = vpop.f32.mrf.mxu1  ;;  %v1905_v26 = vrot.slane %v1904_v17, 2 }
  0xf8   : > { %v1233_v23 = vadd.f32 %v1232_v27, %v1163_v33  ;;  %v1929_v27 = vsel %vm423_vm0, %v1920_v14, 0.0  ;;  %v1911_v33 = vadd.f32 %v1910_v7, %v1909_v2  ;;  %v2096_v2 = vld [vmem:[%s2821_s12 + $0x8] sm:$0xff]  ;;  %v2121_v14 = vld [vmem:[%s2821_s12 + $0xd0] sm:$0xff] }
  0xf9   : > { %v1234_v34 = vpop.f32.mrf.mxu0  ;;  %v1304_v35 = vpop.f32.mrf.mxu1  ;;  %v2160_v7 = vmul.f32 0.02, %v2096_v2  ;;  %v2106_v2 = vld [vmem:[%s2821_s12 + $0x58] sm:$0xff] }
  0xfa   : > { %v1303_v36 = vadd.f32 %v1302_v28, %v1233_v23  ;;  %v1925_v28 = vrot.slane %v1924_v3, 2  ;;  %v1930_v34 = vrot.slane %v1929_v27, 4  ;;  %v1886_v35 = vadd.f32 %v1885_v8, %v1884_v30  ;;  %v2097_v8 = vld [vmem:[%s2821_s12 + $0x10] sm:$0xff] }
  0xfb   : > { %v1891_v23 = vadd.f32 %v1890_v22, %v1889_v31  ;;  %v2181_v30 = vmul.f32 0.02, %v2117_v54  ;;  %v2122_v31 = vld [vmem:[%s2821_s12 + $0xd8] sm:$0xff] }
  0xfc   : > { %v2098_v22 = vld [vmem:[%s2821_s12 + $0x18] sm:$0xff] }
 0x103   : > { %v1372_v29 = vpop.f32.mrf.mxu0 }
 0x104   : > { %v1442_v37 = vpop.f32.mrf.mxu1  ;;  %v1373_v38 = vadd.f32 %v1372_v29, %v1303_v36  ;;  %v1906_v36 = vadd.f32 %v1905_v26, %v1904_v17  ;;  %v1926_v29 = vadd.f32 %v1925_v28, %v1924_v3  ;;  %v2182_v17 = vmul.f32 0.02, %v2118_v13 }
 0x105   : > { %v1374_v39 = vpop.f32.mrf.mxu0  ;;  %v2159_v3 = vmul.f32 0.02, %v2095_v1  ;;  %v2185_v26 = vmul.f32 0.02, %v2121_v14  ;;  %v2105_v1 = vld [vmem:[%s2821_s12 + $0x50] sm:$0xff] }
 0x106   : > { %v1444_v32 = vpop.f32.mrf.mxu1  ;;  %v1443_v41 = vadd.f32 %v1442_v37, %v1373_v38  ;;  %v1912_v37 = vrot.slane %v1911_v33, 2  ;;  %v1931_v38 = vadd.f32 %v1930_v34, %v1929_v27  ;;  %v1887_v39 = vrot.slane %v1886_v35, 1 }
 0x107   : > { %v1892_v32 = vrot.slane %v1891_v23, 2  ;;  %v2186_v27 = vmul.f32 0.02, %v2122_v31  ;;  %v2161_v34 = vmul.f32 0.02, %v2097_v8  ;;  %v2141_v8 = vld [vmem:[%s2821_s12 + $0x170] sm:$0xff] }
 0x108   : > { %v1512_v40 = vpop.f32.mrf.mxu0 }
 0x109   : > { %v1513_v42 = vadd.f32 %v1512_v40, %v1443_v41  ;;  %v1907_v40 = vrot.slane %v1906_v36, 1  ;;  %v1927_v41 = vrot.slane %v1926_v29, 1 }
 0x10a   : > { %v1514_v4 = vpop.f32.mrf.mxu0  ;;  %v1582_v5 = vpop.f32.mrf.mxu1 }
 0x10b   : > { %v1583_v44 = vadd.f32 %v1582_v5, %v1513_v42  ;;  %v1913_v4 = vadd.f32 %v1912_v37, %v1911_v33  ;;  %v1932_v5 = vrot.slane %v1931_v38, 2  ;;  %v1888_v42 = vadd.f32 %v1887_v39, %v1886_v35 }
 0x10c   : > { %v1584_v43 = vpop.f32.mrf.mxu1  ;;  %v2162_v35 = vmul.f32 0.02, %v2098_v22  ;;  %v2142_v22 = vld [vmem:[%s2821_s12 + $0x178] sm:$0xff] }
 0x10d   : > { %v1893_v43 = vadd.f32 %v1892_v32, %v1891_v23  ;;  %v2125_v23 = vld [vmem:[%s2821_s12 + $0xf0] sm:$0xff]  ;;  %v2099_v32 = vld [vmem:[%s2821_s12 + $0x20] sm:$0xff] }
 0x113   : > { %v1652_v45 = vpop.f32.mrf.mxu0 }
 0x114   : > { %v1653_v46 = vadd.f32 %v1652_v45, %v1583_v44  ;;  %v1908_v44 = vadd.f32 %v1907_v40, %v1906_v36  ;;  %v1928_v45 = vadd.f32 %v1927_v41, %v1926_v29  ;;  %v2126_v36 = vld [vmem:[%s2821_s12 + $0xf8] sm:$0xff]  ;;  %v2100_v40 = vld [vmem:[%s2821_s12 + $0x28] sm:$0xff]  ;;  %v2189_v41 = vmul.f32 0.02, %v2125_v23 }
 0x115   : > { %v1722_v47 = vpop.f32.mrf.mxu1  ;;  %v1654_v24 = vpop.f32.mrf.mxu0  ;;  %v2205_v23 = vmul.f32 0.02, %v2141_v8 }
 0x116   : > { %v1723_v11 = vadd.f32 %v1722_v47, %v1653_v46  ;;  %v1914_v47 = vrot.slane %v1913_v4, 1  ;;  %v1961_v24 = vlaneseq }
 0x117   : > { %v1724_v48 = vpop.f32.mrf.mxu1 }
 0x118   : > { %v1894_v48 = vrot.slane %v1893_v43, 1 }
 0x119   : > { %v1792_v15 = vpop.f32.mrf.mxu0 }
 0x11a   : > { %v1793_v49 = vadd.f32 %v1792_v15, %v1723_v11  ;;  %v1933_v11 = vadd.f32 %v1932_v5, %v1931_v38  ;;  %v1896_v15 = vmul.f32 0.33333334, %v1888_v42 }
 0x11b   : > { %v1862_v50 = vpop.f32.mrf.mxu1  ;;  %v1794_v51 = vpop.f32.mrf.mxu0 }
 0x11c   : > { %v1863_v10 = vadd.f32 %v1862_v50, %v1793_v49  ;;  %v1916_v49 = vmul.f32 0.33333334, %v1908_v44  ;;  %v1936_v50 = vmul.f32 0.33333334, %v1928_v45  ;;  %v1915_v51 = vadd.f32 %v1914_v47, %v1913_v4  ;;  %v2129_v45 = vld [vmem:[%s2821_s12 + $0x110] sm:$0xff] }
 0x11d   : > { %v1864_v52 = vpop.f32.mrf.mxu1  ;;  %v2190_v4 = vmul.f32 0.02, %v2126_v36  ;;  %v2164_v44 = vmul.f32 0.02, %v2100_v40  ;;  %v2206_v36 = vmul.f32 0.02, %v2142_v22 }
 0x11e   : > { %v1867_v12 = vsel %vm1866_vm1, %v1863_v10, -inf  ;;  %v1917_v58 = vmul.f32 0.33333334, %v1915_v51  ;;  %v2146_v40 = vld [vmem:[%s2821_s12 + $0x198] sm:$0xff] }
 0x11f   : > { %1868 = vmax.xlane.f32.xlu0 %v1867_v12 }
 0x1a8   : > { %v1869_v53 = vpop.xlane.xlu0 %1868 }
 0x1a9   : > { %v1870_v9 = vsub.f32 %v1863_v10, %v1869_v53  ;;  %v1962_v10 = vshrl.u32 %v1961_v24, 7  ;;  %v1934_v53 = vrot.slane %v1933_v11, 1 }
 0x1ab   : > { %v1871_v55 = vmul.f32 1.442695, %v1870_v9  ;;  %v1895_v9 = vadd.f32 %v1894_v48, %v1893_v43  ;;  %v1963_v20 = vsub.s32 0, %v1962_v10  ;;  %v2163_v43 = vmul.f32 0.02, %v2099_v32  ;;  %v2145_v32 = vld [vmem:[%s2821_s12 + $0x190] sm:$0xff] }
 0x1ad   : > { %2528 = vpow2.f32 %v1871_v55 }
 0x1ba   : > { %v2529_v56 = vpop.eup %2528 }
 0x1bb   : > { %v1873_v57 = vsel %vm1866_vm1, %v2529_v56, 0.0 }
 0x1bc   : > { %1874 = vadd.xlane.f32.xlu0 %v1873_v57 }
 0x245   : > { %v1875_v59 = vpop.xlane.xlu0 %1874 }
 0x246   : > { %2530 = vrcp.f32 %v1875_v59 }
 0x253   : > { %v2531_v21 = vpop.eup %2530 }
 0x254   : > { %v1877_v60 = vmul.f32 %v2531_v21, %v2529_v56  ;;  %v1935_v21 = vadd.f32 %v1934_v53, %v1933_v11 }
 0x256   : > { %1954 = vperm.xlu0 %2492, %v1877_v60   ;;  %1940 = vperm.xlu1 %2490, %v1877_v60   ;;  %v1937_v63 = vmul.f32 0.33333334, %v1935_v21  ;;  %v2104_v21 = vld [vmem:[%s2821_s12 + $0x48] sm:$0xff] }
 0x25a   : > { %2491 = vset.pattern.permute.xlu1 %v2542_v6 }
 0x25b   : > { %1946 = vperm.xlu1 %2491, %v1877_v60   ;;  %v1897_v60 = vmul.f32 0.33333334, %v1895_v9  ;;  %v2133_v9 = vld [vmem:[%s2821_s12 + $0x130] sm:$0xff] }
 0x2d1   : > { %v1941_v46 = vpop.permute.xlu1 %1940  ;;  %v1955_v52 = vpop.permute.xlu0 %1954 }
 0x2d2   : > { %v1943_v55 = vmul.f32 %v1941_v46, %v1896_v15  ;;  %v1957_v57 = vmul.f32 %v1955_v52, %v1936_v50  ;;  %v1944_v18 = vmul.f32 %v1941_v46, %v1897_v60  ;;  %v1958_v19 = vmul.f32 %v1955_v52, %v1937_v63  ;;  %v2130_v46 = vld [vmem:[%s2821_s12 + $0x118] sm:$0xff]  ;;  %v2101_v15 = vld [vmem:[%s2821_s12 + $0x30] sm:$0xff] }
 0x2d3   : > { %v2193_v50 = vmul.f32 0.02, %v2129_v45  ;;  %v2194_v51 = vmul.f32 0.02, %v2130_v46  ;;  %v2197_v60 = vmul.f32 0.02, %v2133_v9 }
 0x2d4   : > { %v2209_v45 = vmul.f32 0.02, %v2145_v32  ;;  %v2210_v46 = vmul.f32 0.02, %v2146_v40 }
 0x2d6   : > { %v1947_v12 = vpop.permute.xlu1 %1946 }
 0x2d7   : > { %v1949_v56 = vmul.f32 %v1947_v12, %v1916_v49  ;;  %v1950_v61 = vmul.f32 %v1947_v12, %v1917_v58  ;;  %v2102_v49 = vld [vmem:[%s2821_s12 + $0x38] sm:$0xff]  ;;  %v2165_v12 = vmul.f32 0.02, %v2101_v15  ;;  %v2149_v15 = vld [vmem:[%s2821_s12 + $0x1b0] sm:$0xff] }
 0x2d8   : > { %v2166_v53 = vmul.f32 0.02, %v2102_v49  ;;  %v2150_v49 = vld [vmem:[%s2821_s12 + $0x1b8] sm:$0xff]  ;;  %v2213_v9 = vmul.f32 0.02, %v2149_v15  ;;  %v2128_v15 = vld [vmem:[%s2821_s12 + $0x108] sm:$0xff] }
 0x2d9   : > { %v1951_v59 = vadd.f32 %v1949_v56, %v1943_v55  ;;  %v1952_v25 = vadd.f32 %v1950_v61, %v1944_v18  ;;  %v2134_v55 = vld [vmem:[%s2821_s12 + $0x138] sm:$0xff]  ;;  %v2168_v18 = vmul.f32 0.02, %v2104_v21 }
 0x2da   : > { %v2154_v21 = vld [vmem:[%s2821_s12 + $0x1d8] sm:$0xff] }
 0x2db   : > { %v1959_v6 = vadd.f32 %v1957_v57, %v1951_v59  ;;  %v1960_v16 = vadd.f32 %v1958_v19, %v1952_v25  ;;  %v2103_v59 = vld [vmem:[%s2821_s12 + $0x40] sm:$0xff]  ;;  %v2137_v25 = vld [vmem:[%s2821_s12 + $0x150] sm:$0xff]  ;;  %v2138_v19 = vld [vmem:[%s2821_s12 + $0x158] sm:$0xff] }
 0x2dc   : > { %v2167_v63 = vmul.f32 0.02, %v2103_v59  ;;  %v2153_v59 = vld [vmem:[%s2821_s12 + $0x1d0] sm:$0xff] }
 0x2dd   : > { %v1964_v62 = vrot.slane %v1959_v6, %v1963_v20  ;;  %v2031_v0 = vrot.slane %v1960_v16, %v1963_v20  ;;  %v2198_v6 = vmul.f32 0.02, %v2134_v55  ;;  %v2214_v55 = vmul.f32 0.02, %v2150_v49 }
 0x2df   : > { %2010 = vbcast.lane.b32.xlu0 %v1964_v62, 344  ;;  %1966 = vbcast.lane.b32.xlu1 %v1964_v62, 256 }
 0x2e3   : > { %2018 = vbcast.lane.b32.xlu0 %v1964_v62, 360  ;;  %1970 = vbcast.lane.b32.xlu1 %v1964_v62, 264 }
 0x2e7   : > { %2026 = vbcast.lane.b32.xlu0 %v1964_v62, 376  ;;  %1974 = vbcast.lane.b32.xlu1 %v1964_v62, 272 }
 0x2eb   : > { %2037 = vbcast.lane.b32.xlu0 %v2031_v0, 264  ;;  %1978 = vbcast.lane.b32.xlu1 %v1964_v62, 280 }
 0x2ef   : > { %2045 = vbcast.lane.b32.xlu0 %v2031_v0, 280  ;;  %1982 = vbcast.lane.b32.xlu1 %v1964_v62, 288 }
 0x2f3   : > { %2053 = vbcast.lane.b32.xlu0 %v2031_v0, 296  ;;  %1986 = vbcast.lane.b32.xlu1 %v1964_v62, 296 }
 0x2f7   : > { %2061 = vbcast.lane.b32.xlu0 %v2031_v0, 312  ;;  %1990 = vbcast.lane.b32.xlu1 %v1964_v62, 304 }
 0x2fb   : > { %2069 = vbcast.lane.b32.xlu0 %v2031_v0, 328  ;;  %1994 = vbcast.lane.b32.xlu1 %v1964_v62, 312 }
 0x2ff   : > { %2077 = vbcast.lane.b32.xlu0 %v2031_v0, 344  ;;  %1998 = vbcast.lane.b32.xlu1 %v1964_v62, 320 }
 0x303   : > { %2085 = vbcast.lane.b32.xlu0 %v2031_v0, 360  ;;  %2002 = vbcast.lane.b32.xlu1 %v1964_v62, 328 }
 0x307   : > { %2093 = vbcast.lane.b32.xlu0 %v2031_v0, 376  ;;  %2006 = vbcast.lane.b32.xlu1 %v1964_v62, 336 }
 0x30b   : > { %2014 = vbcast.lane.b32.xlu1 %v1964_v62, 352 }
 0x30f   : > { %2022 = vbcast.lane.b32.xlu1 %v1964_v62, 368 }
 0x313   : > { %2033 = vbcast.lane.b32.xlu1 %v2031_v0, 256 }
 0x317   : > { %2041 = vbcast.lane.b32.xlu1 %v2031_v0, 272 }
 0x31b   : > { %2049 = vbcast.lane.b32.xlu1 %v2031_v0, 288 }
 0x31f   : > { %2057 = vbcast.lane.b32.xlu1 %v2031_v0, 304 }
 0x323   : > { %2065 = vbcast.lane.b32.xlu1 %v2031_v0, 320 }
 0x327   : > { %2073 = vbcast.lane.b32.xlu1 %v2031_v0, 336 }
 0x32b   : > { %2081 = vbcast.lane.b32.xlu1 %v2031_v0, 352 }
 0x32f   : > { %2089 = vbcast.lane.b32.xlu1 %v2031_v0, 368 }
 0x351   : > { %v2011_v28 = vpop.permute.xlu0 %2010  ;;  %v1967_v33 = vpop.permute.xlu1 %1966 }
 0x352   : > { %v2245_v29 = vadd.f32 %v2181_v30, %v2011_v28  ;;  %v2246_v37 = vadd.f32 %v2182_v17, %v2011_v28  ;;  %v2223_v38 = vadd.f32 %v2159_v3, %v1967_v33  ;;  %v2224_v39 = vadd.f32 %v2160_v7, %v1967_v33 }
 0x353   : > { %v2201_v30 = vmul.f32 0.02, %v2137_v25  ;;  %v2202_v17 = vmul.f32 0.02, %v2138_v19  ;;  %v2169_v3 = vmul.f32 0.02, %v2105_v1 }
 0x354   : > { %2309 = vst [vmem:[%s2834_s14 + $0xb0] sm:$0xff] %v2245_v29  ;;  %2310 = vst [vmem:[%s2834_s14 + $0xb8] sm:$0xff] %v2246_v37  ;;  %v2170_v7 = vmul.f32 0.02, %v2106_v2  ;;  %v2217_v25 = vmul.f32 0.02, %v2153_v59 }
 0x355   : > { %2287 = vst [vmem:[%s2834_s14] sm:$0xff] %v2223_v38  ;;  %2288 = vst [vmem:[%s2834_s14 + $0x8] sm:$0xff] %v2224_v39  ;;  %v2019_v5 = vpop.permute.xlu0 %2018  ;;  %v1971_v42 = vpop.permute.xlu1 %1970  ;;  %v2218_v19 = vmul.f32 0.02, %v2154_v21  ;;  %v2157_v1 = vld [vmem:[%s2821_s12 + $0x1f0] sm:$0xff]  ;;  %v2136_v59 = vld [vmem:[%s2821_s12 + $0x148] sm:$0xff] }
 0x356   : > { %v2249_v47 = vadd.f32 %v2185_v26, %v2019_v5  ;;  %v2250_v24 = vadd.f32 %v2186_v27, %v2019_v5  ;;  %v2225_v11 = vadd.f32 %v2161_v34, %v1971_v42  ;;  %v2226_v48 = vadd.f32 %v2162_v35, %v1971_v42  ;;  %v2107_v34 = vld [vmem:[%s2821_s12 + $0x60] sm:$0xff]  ;;  %v2108_v35 = vld [vmem:[%s2821_s12 + $0x68] sm:$0xff] }
 0x357   : > { %v2171_v38 = vmul.f32 0.02, %v2107_v34  ;;  %v2172_v39 = vmul.f32 0.02, %v2108_v35  ;;  %v2221_v8 = vmul.f32 0.02, %v2157_v1 }
 0x358   : > { %2313 = vst [vmem:[%s2834_s14 + $0xd0] sm:$0xff] %v2249_v47  ;;  %2314 = vst [vmem:[%s2834_s14 + $0xd8] sm:$0xff] %v2250_v24  ;;  %v2144_v1 = vld [vmem:[%s2821_s12 + $0x188] sm:$0xff] }
 0x359   : > { %2289 = vst [vmem:[%s2834_s14 + $0x10] sm:$0xff] %v2225_v11  ;;  %2290 = vst [vmem:[%s2834_s14 + $0x18] sm:$0xff] %v2226_v48  ;;  %v2027_v10 = vpop.permute.xlu0 %2026  ;;  %v1975_v52 = vpop.permute.xlu1 %1974 }
 0x35a   : > { %v2253_v56 = vadd.f32 %v2189_v41, %v2027_v10  ;;  %v2254_v57 = vadd.f32 %v2190_v4, %v2027_v10  ;;  %v2227_v58 = vadd.f32 %v2163_v43, %v1975_v52  ;;  %v2228_v20 = vadd.f32 %v2164_v44, %v1975_v52  ;;  %v2109_v43 = vld [vmem:[%s2821_s12 + $0x70] sm:$0xff]  ;;  %v2110_v44 = vld [vmem:[%s2821_s12 + $0x78] sm:$0xff] }
 0x35b   : > { %v2173_v11 = vmul.f32 0.02, %v2109_v43  ;;  %v2174_v48 = vmul.f32 0.02, %v2110_v44  ;;  %v2123_v43 = vld [vmem:[%s2821_s12 + $0xe0] sm:$0xff]  ;;  %v2124_v44 = vld [vmem:[%s2821_s12 + $0xe8] sm:$0xff] }
 0x35c   : > { %2317 = vst [vmem:[%s2834_s14 + $0xf0] sm:$0xff] %v2253_v56  ;;  %2318 = vst [vmem:[%s2834_s14 + $0xf8] sm:$0xff] %v2254_v57 }
 0x35d   : > { %2291 = vst [vmem:[%s2834_s14 + $0x20] sm:$0xff] %v2227_v58  ;;  %2292 = vst [vmem:[%s2834_s14 + $0x28] sm:$0xff] %v2228_v20  ;;  %v2038_v61 = vpop.permute.xlu0 %2037  ;;  %v1979_v62 = vpop.permute.xlu1 %1978 }
 0x35e   : > { %v2257_v16 = vadd.f32 %v2193_v50, %v2038_v61  ;;  %v2258_v0 = vadd.f32 %v2194_v51, %v2038_v61  ;;  %v2229_v54 = vadd.f32 %v2165_v12, %v1979_v62  ;;  %v2230_v13 = vadd.f32 %v2166_v53, %v1979_v62  ;;  %v2111_v12 = vld [vmem:[%s2821_s12 + $0x80] sm:$0xff]  ;;  %v2112_v53 = vld [vmem:[%s2821_s12 + $0x88] sm:$0xff] }
 0x35f   : > { %v2175_v58 = vmul.f32 0.02, %v2111_v12  ;;  %v2176_v20 = vmul.f32 0.02, %v2112_v53  ;;  %v2131_v12 = vld [vmem:[%s2821_s12 + $0x120] sm:$0xff]  ;;  %v2132_v53 = vld [vmem:[%s2821_s12 + $0x128] sm:$0xff] }
 0x360   : > { %2321 = vst [vmem:[%s2834_s14 + $0x110] sm:$0xff] %v2257_v16  ;;  %2322 = vst [vmem:[%s2834_s14 + $0x118] sm:$0xff] %v2258_v0 }
 0x361   : > { %2293 = vst [vmem:[%s2834_s14 + $0x30] sm:$0xff] %v2229_v54  ;;  %2294 = vst [vmem:[%s2834_s14 + $0x38] sm:$0xff] %v2230_v13  ;;  %v2046_v14 = vpop.permute.xlu0 %2045  ;;  %v1983_v31 = vpop.permute.xlu1 %1982 }
 0x362   : > { %v2261_v26 = vadd.f32 %v2197_v60, %v2046_v14  ;;  %v2262_v27 = vadd.f32 %v2198_v6, %v2046_v14  ;;  %v2231_v28 = vadd.f32 %v2167_v63, %v1983_v31  ;;  %v2232_v33 = vadd.f32 %v2168_v18, %v1983_v31  ;;  %v2113_v63 = vld [vmem:[%s2821_s12 + $0x90] sm:$0xff]  ;;  %v2114_v18 = vld [vmem:[%s2821_s12 + $0x98] sm:$0xff] }
 0x363   : > { %v2177_v54 = vmul.f32 0.02, %v2113_v63  ;;  %v2178_v13 = vmul.f32 0.02, %v2114_v18  ;;  %v2158_v31 = vld [vmem:[%s2821_s12 + $0x1f8] sm:$0xff]  ;;  %v2139_v63 = vld [vmem:[%s2821_s12 + $0x160] sm:$0xff] }
 0x364   : > { %2325 = vst [vmem:[%s2834_s14 + $0x130] sm:$0xff] %v2261_v26  ;;  %2326 = vst [vmem:[%s2834_s14 + $0x138] sm:$0xff] %v2262_v27  ;;  %v2222_v27 = vmul.f32 0.02, %v2158_v31  ;;  %v2140_v18 = vld [vmem:[%s2821_s12 + $0x168] sm:$0xff] }
 0x365   : > { %2295 = vst [vmem:[%s2834_s14 + $0x40] sm:$0xff] %v2231_v28  ;;  %2296 = vst [vmem:[%s2834_s14 + $0x48] sm:$0xff] %v2232_v33  ;;  %v2054_v29 = vpop.permute.xlu0 %2053  ;;  %v1987_v37 = vpop.permute.xlu1 %1986  ;;  %v2208_v31 = vmul.f32 0.02, %v2144_v1 }
 0x366   : > { %v2265_v41 = vadd.f32 %v2201_v30, %v2054_v29  ;;  %v2266_v4 = vadd.f32 %v2202_v17, %v2054_v29  ;;  %v2233_v5 = vadd.f32 %v2169_v3, %v1987_v37  ;;  %v2234_v42 = vadd.f32 %v2170_v7, %v1987_v37  ;;  %v2115_v3 = vld [vmem:[%s2821_s12 + $0xa0] sm:$0xff]  ;;  %v2116_v7 = vld [vmem:[%s2821_s12 + $0xa8] sm:$0xff] }
 0x367   : > { %v2179_v28 = vmul.f32 0.02, %v2115_v3  ;;  %v2180_v33 = vmul.f32 0.02, %v2116_v7  ;;  %v2119_v29 = vld [vmem:[%s2821_s12 + $0xc0] sm:$0xff]  ;;  %v2120_v37 = vld [vmem:[%s2821_s12 + $0xc8] sm:$0xff] }
 0x368   : > { %2329 = vst [vmem:[%s2834_s14 + $0x150] sm:$0xff] %v2265_v41  ;;  %2330 = vst [vmem:[%s2834_s14 + $0x158] sm:$0xff] %v2266_v4  ;;  %v2183_v32 = vmul.f32 0.02, %v2119_v29  ;;  %v2184_v40 = vmul.f32 0.02, %v2120_v37 }
 0x369   : > { %2297 = vst [vmem:[%s2834_s14 + $0x50] sm:$0xff] %v2233_v5  ;;  %2298 = vst [vmem:[%s2834_s14 + $0x58] sm:$0xff] %v2234_v42  ;;  %v2062_v47 = vpop.permute.xlu0 %2061  ;;  %v1991_v24 = vpop.permute.xlu1 %1990  ;;  %v2147_v3 = vld [vmem:[%s2821_s12 + $0x1a0] sm:$0xff]  ;;  %v2148_v7 = vld [vmem:[%s2821_s12 + $0x1a8] sm:$0xff] }
 0x36a   : > { %v2269_v50 = vadd.f32 %v2205_v23, %v2062_v47  ;;  %v2270_v51 = vadd.f32 %v2206_v36, %v2062_v47  ;;  %v2235_v10 = vadd.f32 %v2171_v38, %v1991_v24  ;;  %v2236_v52 = vadd.f32 %v2172_v39, %v1991_v24 }
 0x36b   : > { %v2187_v24 = vmul.f32 0.02, %v2123_v43 }
 0x36c   : > { %2333 = vst [vmem:[%s2834_s14 + $0x170] sm:$0xff] %v2269_v50  ;;  %2334 = vst [vmem:[%s2834_s14 + $0x178] sm:$0xff] %v2270_v51 }
 0x36d   : > { %2299 = vst [vmem:[%s2834_s14 + $0x60] sm:$0xff] %v2235_v10  ;;  %2300 = vst [vmem:[%s2834_s14 + $0x68] sm:$0xff] %v2236_v52  ;;  %v2070_v56 = vpop.permute.xlu0 %2069  ;;  %v1995_v57 = vpop.permute.xlu1 %1994  ;;  %v2192_v52 = vmul.f32 0.02, %v2128_v15 }
 0x36e   : > { %v2273_v60 = vadd.f32 %v2209_v45, %v2070_v56  ;;  %v2274_v6 = vadd.f32 %v2210_v46, %v2070_v56  ;;  %v2237_v61 = vadd.f32 %v2173_v11, %v1995_v57  ;;  %v2238_v62 = vadd.f32 %v2174_v48, %v1995_v57  ;;  %v2127_v48 = vld [vmem:[%s2821_s12 + $0x100] sm:$0xff] }
 0x36f   : > { %v2188_v11 = vmul.f32 0.02, %v2124_v44  ;;  %v2191_v10 = vmul.f32 0.02, %v2127_v48  ;;  %v2195_v57 = vmul.f32 0.02, %v2131_v12 }
 0x370   : > { %2337 = vst [vmem:[%s2834_s14 + $0x190] sm:$0xff] %v2273_v60  ;;  %2338 = vst [vmem:[%s2834_s14 + $0x198] sm:$0xff] %v2274_v6 }
 0x371   : > { %2301 = vst [vmem:[%s2834_s14 + $0x70] sm:$0xff] %v2237_v61  ;;  %2302 = vst [vmem:[%s2834_s14 + $0x78] sm:$0xff] %v2238_v62  ;;  %v2078_v16 = vpop.permute.xlu0 %2077  ;;  %v1999_v0 = vpop.permute.xlu1 %1998  ;;  %v2200_v62 = vmul.f32 0.02, %v2136_v59 }
 0x372   : > { %v2277_v2 = vadd.f32 %v2213_v9, %v2078_v16  ;;  %v2278_v30 = vadd.f32 %v2214_v55, %v2078_v16  ;;  %v2239_v17 = vadd.f32 %v2175_v58, %v1999_v0  ;;  %v2240_v14 = vadd.f32 %v2176_v20, %v1999_v0  ;;  %v2135_v20 = vld [vmem:[%s2821_s12 + $0x140] sm:$0xff] }
 0x373   : > { %v2196_v58 = vmul.f32 0.02, %v2132_v53  ;;  %v2199_v61 = vmul.f32 0.02, %v2135_v20  ;;  %v2203_v0 = vmul.f32 0.02, %v2139_v63 }
 0x374   : > { %2341 = vst [vmem:[%s2834_s14 + $0x1b0] sm:$0xff] %v2277_v2  ;;  %2342 = vst [vmem:[%s2834_s14 + $0x1b8] sm:$0xff] %v2278_v30 }
 0x375   : > { %2303 = vst [vmem:[%s2834_s14 + $0x80] sm:$0xff] %v2239_v17  ;;  %2304 = vst [vmem:[%s2834_s14 + $0x88] sm:$0xff] %v2240_v14  ;;  %v2086_v22 = vpop.permute.xlu0 %2085  ;;  %v2003_v26 = vpop.permute.xlu1 %2002 }
 0x376   : > { %v2281_v34 = vadd.f32 %v2217_v25, %v2086_v22  ;;  %v2282_v35 = vadd.f32 %v2218_v19, %v2086_v22  ;;  %v2241_v23 = vadd.f32 %v2177_v54, %v2003_v26  ;;  %v2242_v36 = vadd.f32 %v2178_v13, %v2003_v26  ;;  %v2143_v13 = vld [vmem:[%s2821_s12 + $0x180] sm:$0xff] }
 0x377   : > { %v2204_v54 = vmul.f32 0.02, %v2140_v18  ;;  %v2207_v14 = vmul.f32 0.02, %v2143_v13 }
 0x378   : > { %2345 = vst [vmem:[%s2834_s14 + $0x1d0] sm:$0xff] %v2281_v34  ;;  %2346 = vst [vmem:[%s2834_s14 + $0x1d8] sm:$0xff] %v2282_v35  ;;  %v2152_v34 = vld [vmem:[%s2821_s12 + $0x1c8] sm:$0xff] }
 0x379   : > { %2305 = vst [vmem:[%s2834_s14 + $0x90] sm:$0xff] %v2241_v23  ;;  %2306 = vst [vmem:[%s2834_s14 + $0x98] sm:$0xff] %v2242_v36  ;;  %v2094_v38 = vpop.permute.xlu0 %2093  ;;  %v2007_v39 = vpop.permute.xlu1 %2006  ;;  %v2216_v37 = vmul.f32 0.02, %v2152_v34 }
 0x37a   : > { %v2285_v41 = vadd.f32 %v2221_v8, %v2094_v38  ;;  %v2286_v4 = vadd.f32 %v2222_v27, %v2094_v38  ;;  %v2243_v5 = vadd.f32 %v2179_v28, %v2007_v39  ;;  %v2244_v42 = vadd.f32 %v2180_v33, %v2007_v39  ;;  %v2151_v33 = vld [vmem:[%s2821_s12 + $0x1c0] sm:$0xff]  ;;  %v2156_v39 = vld [vmem:[%s2821_s12 + $0x1e8] sm:$0xff] }
 0x37b   : > { %v2211_v27 = vmul.f32 0.02, %v2147_v3  ;;  %v2212_v28 = vmul.f32 0.02, %v2148_v7  ;;  %v2215_v29 = vmul.f32 0.02, %v2151_v33 }
 0x37c   : > { %2349 = vst [vmem:[%s2834_s14 + $0x1f0] sm:$0xff] %v2285_v41  ;;  %2350 = vst [vmem:[%s2834_s14 + $0x1f8] sm:$0xff] %v2286_v4  ;;  %v2155_v38 = vld [vmem:[%s2821_s12 + $0x1e0] sm:$0xff] }
 0x37d   : > { %2307 = vst [vmem:[%s2834_s14 + $0xa0] sm:$0xff] %v2243_v5  ;;  %2308 = vst [vmem:[%s2834_s14 + $0xa8] sm:$0xff] %v2244_v42  ;;  %v2015_v45 = vpop.permute.xlu1 %2014  ;;  %v2219_v4 = vmul.f32 0.02, %v2155_v38  ;;  %v2220_v5 = vmul.f32 0.02, %v2156_v39 }
 0x37e   : > { %v2247_v46 = vadd.f32 %v2183_v32, %v2015_v45  ;;  %v2248_v47 = vadd.f32 %v2184_v40, %v2015_v45 }
 0x380   : > { %2311 = vst [vmem:[%s2834_s14 + $0xc0] sm:$0xff] %v2247_v46  ;;  %2312 = vst [vmem:[%s2834_s14 + $0xc8] sm:$0xff] %v2248_v47 }
 0x381   : > { %v2023_v49 = vpop.permute.xlu1 %2022 }
 0x382   : > { %v2251_v50 = vadd.f32 %v2187_v24, %v2023_v49  ;;  %v2252_v51 = vadd.f32 %v2188_v11, %v2023_v49 }
 0x384   : > { %2315 = vst [vmem:[%s2834_s14 + $0xe0] sm:$0xff] %v2251_v50  ;;  %2316 = vst [vmem:[%s2834_s14 + $0xe8] sm:$0xff] %v2252_v51 }
 0x385   : > { %v2034_v9 = vpop.permute.xlu1 %2033 }
 0x386   : > { %v2255_v55 = vadd.f32 %v2191_v10, %v2034_v9  ;;  %v2256_v56 = vadd.f32 %v2192_v52, %v2034_v9 }
 0x388   : > { %2319 = vst [vmem:[%s2834_s14 + $0x100] sm:$0xff] %v2255_v55  ;;  %2320 = vst [vmem:[%s2834_s14 + $0x108] sm:$0xff] %v2256_v56 }
 0x389   : > { %v2042_v21 = vpop.permute.xlu1 %2041 }
 0x38a   : > { %v2259_v60 = vadd.f32 %v2195_v57, %v2042_v21  ;;  %v2260_v6 = vadd.f32 %v2196_v58, %v2042_v21 }
 0x38c   : > { %2323 = vst [vmem:[%s2834_s14 + $0x120] sm:$0xff] %v2259_v60  ;;  %2324 = vst [vmem:[%s2834_s14 + $0x128] sm:$0xff] %v2260_v6 }
 0x38d   : > { %v2050_v25 = vpop.permute.xlu1 %2049 }
 0x38e   : > { %v2263_v19 = vadd.f32 %v2199_v61, %v2050_v25  ;;  %v2264_v16 = vadd.f32 %v2200_v62, %v2050_v25 }
 0x390   : > { %2327 = vst [vmem:[%s2834_s14 + $0x140] sm:$0xff] %v2263_v19  ;;  %2328 = vst [vmem:[%s2834_s14 + $0x148] sm:$0xff] %v2264_v16 }
 0x391   : > { %v2058_v2 = vpop.permute.xlu1 %2057 }
 0x392   : > { %v2267_v30 = vadd.f32 %v2203_v0, %v2058_v2  ;;  %v2268_v17 = vadd.f32 %v2204_v54, %v2058_v2 }
 0x394   : > { %2331 = vst [vmem:[%s2834_s14 + $0x160] sm:$0xff] %v2267_v30  ;;  %2332 = vst [vmem:[%s2834_s14 + $0x168] sm:$0xff] %v2268_v17 }
 0x395   : > { %v2066_v8 = vpop.permute.xlu1 %2065 }
 0x396   : > { %v2271_v22 = vadd.f32 %v2207_v14, %v2066_v8  ;;  %v2272_v26 = vadd.f32 %v2208_v31, %v2066_v8 }
 0x398   : > { %2335 = vst [vmem:[%s2834_s14 + $0x180] sm:$0xff] %v2271_v22  ;;  %2336 = vst [vmem:[%s2834_s14 + $0x188] sm:$0xff] %v2272_v26 }
 0x399   : > { %v2074_v35 = vpop.permute.xlu1 %2073 }
 0x39a   : > { %v2275_v23 = vadd.f32 %v2211_v27, %v2074_v35  ;;  %v2276_v36 = vadd.f32 %v2212_v28, %v2074_v35 }
 0x39c   : > { %2339 = vst [vmem:[%s2834_s14 + $0x1a0] sm:$0xff] %v2275_v23  ;;  %2340 = vst [vmem:[%s2834_s14 + $0x1a8] sm:$0xff] %v2276_v36 }
 0x39d   : > { %v2082_v32 = vpop.permute.xlu1 %2081 }
 0x39e   : > { %v2279_v40 = vadd.f32 %v2215_v29, %v2082_v32  ;;  %v2280_v41 = vadd.f32 %v2216_v37, %v2082_v32 }
 0x3a0   : > { %2343 = vst [vmem:[%s2834_s14 + $0x1c0] sm:$0xff] %v2279_v40  ;;  %2344 = vst [vmem:[%s2834_s14 + $0x1c8] sm:$0xff] %v2280_v41 }
 0x3a1   : > { %v2090_v42 = vpop.permute.xlu1 %2089 }
 0x3a2   : > { %v2283_v43 = vadd.f32 %v2219_v4, %v2090_v42  ;;  %v2284_v44 = vadd.f32 %v2220_v5, %v2090_v42 }
 0x3a4   : > { %2347 = vst [vmem:[%s2834_s14 + $0x1e0] sm:$0xff] %v2283_v43  ;;  %2348 = vst [vmem:[%s2834_s14 + $0x1e8] sm:$0xff] %v2284_v44 }
 0x3a5 PF: > { %s17_s24 = sadd.s32 1, %s2538_s24  }
 0x3a6   : > { %p14_p4 = scmp.ge.s32.totalorder %s17_s24, 4  }
 0x3a8   :  { %16 = sbr.rel (!%p14_p4) target bundleno = 1 (0x1), region = 90 }

</bundles_post_ra>
